<compile_context>
chip_gen: v6e
topology: v6e:2x2x1
jax: 0.10.0
libtpu: 0.0.40
codegen_flags: <defaults>
</compile_context>

<pallas_src>
import functools

import jax
import jax.numpy as jnp
from jax.experimental import pallas as pl
from jax.experimental.pallas import tpu as pltpu


def _round_up(x, m):
    return ((x + m - 1) // m) * m


def _vmem_cap_bytes():
    """Per-generation scoped-VMEM ceiling: ~75% of physical VMEM (48 MiB on v7x, 96 MiB v5e/v6e)."""
    try:
        cap = int(pltpu.get_tpu_info().vmem_capacity_bytes)
    except Exception:
        cap = 64 << 20          # conservative fallback (v7x has 64 MiB per TensorCore)
    return max(32 << 20, cap * 3 // 4)


# ----------------------------------------------------------------------------
# Kernel 1: lane-dense transposed conv-GEMM  (Cout, K) x (K, M_tile)   — encoder (stride-2) convs
# ----------------------------------------------------------------------------
def _gemm_kernel(w_ref, x_ref, b_ref, o_ref, *, activation):
    acc = jnp.dot(w_ref[...], x_ref[...], preferred_element_type=jnp.float32)
    acc = acc + b_ref[...]
    if activation == "relu":
        acc = jnp.maximum(acc, 0.0)
    o_ref[...] = acc.astype(o_ref.dtype)


def _choose_tm(kp, m, target_bytes=2 << 20):
    """Lane tile: ~1-2 MiB of x-tile DMA per grid step, multiple of 128, >=2 tiles when M allows."""
    if m <= 128:
        return m                 # single full-extent block
    if m <= 256:
        return 128
    tm = min(int(target_bytes) // (kp * 2), m // 2)
    return max(128, (tm // 128) * 128)


def fused_matmul_t(w, x, b, *, activation="none", out_dtype=jnp.bfloat16):
    """w: (Cout, Kp) bf16, x: (Kp, M) bf16 im2col, b: (Cout, 1) f32 -> (Cout, M) lane-dense."""
    nc, kp = w.shape
    m = x.shape[1]
    tm = _choose_tm(kp, m)
    grid = (pl.cdiv(m, tm),)
    out_bpe = jnp.dtype(out_dtype).itemsize
    # exact footprint: 2x x-tiles + 2x out-tiles + resident weight/bias + compiler scratch.
    est = 2 * kp * tm * 2 + 2 * nc * tm * out_bpe + nc * kp * 2 + nc * 4 + (2 << 20)
    vmem_limit = int(min(max(est * 3 // 2, 16 << 20), _vmem_cap_bytes()))
    return pl.pallas_call(
        functools.partial(_gemm_kernel, activation=activation),
        out_shape=jax.ShapeDtypeStruct((nc, m), out_dtype),
        grid=grid,
        in_specs=[
            pl.BlockSpec((nc, kp), lambda i: (0, 0)),   # resident weight
            # NOTE: pipeline_mode=pl.Buffered(3) on this spec is a second-order follow-up if a
            # profile still shows exposed DMA on the small-K layers.
            pl.BlockSpec((kp, tm), lambda i: (0, i)),   # lane tile of im2col columns
            pl.BlockSpec((nc, 1), lambda i: (0, 0)),    # bias column
        ],
        out_specs=pl.BlockSpec((nc, tm), lambda i: (0, i)),
        compiler_params=pltpu.CompilerParams(
            dimension_semantics=("parallel",),          # v7x dual-TC sharding over M tiles
            vmem_limit_bytes=vmem_limit),
    )(w, x, b)


def _im2col_cnhw(x_cnhw, kh, kw, stride, padding, k_align=16):
    """(C, N, H, W) -> (Kp, M), rows ordered ((i*kw + j)*C + c); K padded to 16 (bf16 sublanes)."""
    c, n, h, w = x_cnhw.shape
    xp = jnp.pad(x_cnhw, ((0, 0), (0, 0), (padding, padding), (padding, padding)))
    ho = (h + 2 * padding - kh) // stride + 1
    wo = (w + 2 * padding - kw) // stride + 1
    m = n * ho * wo
    patches = []
    for i in range(kh):
        for j in range(kw):
            patch = xp[:, :, i:i + ho * stride:stride, j:j + wo * stride:stride]
            patches.append(patch.reshape(c, m))
    k = kh * kw * c
    k_pad = _round_up(k, k_align)
    if k_pad > k:
        patches.append(jnp.zeros((k_pad - k, m), x_cnhw.dtype))
    return jnp.concatenate(patches, axis=0), (n, ho, wo), k


def conv2d_gemm(x_cnhw, weight, bias, *, stride, padding=1, activation="none",
                out_dtype=jnp.bfloat16):
    """PyTorch-equivalent Conv2d on CNHW activations via the transposed-GEMM Pallas kernel."""
    cout, cin, kh, kw = weight.shape
    cols, (n, ho, wo), k = _im2col_cnhw(x_cnhw.astype(jnp.bfloat16), kh, kw, stride, padding)
    k_pad = cols.shape[0]
    w_mat = jnp.transpose(weight, (0, 2, 3, 1)).reshape(cout, k)
    if k_pad > k:
        w_mat = jnp.pad(w_mat, ((0, 0), (0, k_pad - k)))
    out = fused_matmul_t(w_mat.astype(jnp.bfloat16), cols,
                         bias.reshape(cout, 1).astype(jnp.float32),
                         activation=activation, out_dtype=out_dtype)
    return out.reshape(cout, n, ho, wo)


# ----------------------------------------------------------------------------
# Kernel 2: stride-1 3x3 conv with in-kernel im2col over a manually-DMA'd halo slab.
# Two HBM sources replace the channel concat; an optional fused 3x3+sigmoid head (the disparity
# conv) consumes the conv result without it ever touching HBM.
# ----------------------------------------------------------------------------
def _make_conv3x3_kernel(*, ca, cb, cout, k_pad, th, wo, halo, n_rt, rows_slab,
                         head, head_kpad):
    rext = th + 2 * (halo - 1)          # first-conv rows computed per tile (th, or th+2 with head)
    c0 = halo - 1                       # column offset of the pad-1 window inside the slab
    k = 9 * (ca + cb)
    hk = 9 * cout

    def kernel(*refs):
        if head:
            (a_hbm, b_hbm, w_ref, bias_ref, hw_ref, hbias_ref, scale_ref,
             o_ref, slab_a, slab_b, sem_a, sem_b) = refs
        else:
            (a_hbm, b_hbm, w_ref, bias_ref,
             o_ref, slab_a, slab_b, sem_a, sem_b) = refs

        b = pl.program_id(0)
        t = pl.program_id(1)
        slot = t % 2

        def start_fetch(bb, tt, dst):
            r0 = tt * th
            pltpu.make_async_copy(a_hbm.at[:, bb, pl.ds(r0, rows_slab), :],
                                  slab_a.at[dst], sem_a.at[dst]).start()
            pltpu.make_async_copy(b_hbm.at[:, bb, pl.ds(r0, rows_slab), :],
                                  slab_b.at[dst], sem_b.at[dst]).start()

        @pl.when(t == 0)                       # prime this batch's pipeline
        def _():
            start_fetch(b, t, slot)

        if n_rt > 1:                           # prefetch the next row tile into the other slot
            @pl.when(t + 1 < n_rt)
            def _():
                start_fetch(b, t + 1, 1 - slot)

        pltpu.make_async_copy(a_hbm.at[:, 0, pl.ds(0, rows_slab), :],
                              slab_a.at[slot], sem_a.at[slot]).wait()
        pltpu.make_async_copy(b_hbm.at[:, 0, pl.ds(0, rows_slab), :],
                              slab_b.at[slot], sem_b.at[slot]).wait()

        sa = slab_a.at[slot]                   # (ca, rows_slab, wo + 2*halo)
        sb = slab_b.at[slot]
        rows_a = [sa[:, s, :] for s in range(rows_slab)]
        rows_b = [sb[:, s, :] for s in range(rows_slab)]
        w = w_ref[...]                         # (cout, k_pad) bf16
        bias = bias_ref[...]                   # (cout, 1)  f32

        kzero = jnp.zeros((k_pad - k, wo), jnp.bfloat16) if k_pad > k else None

        # First conv: per output row, build the (K, Wo) im2col patch in VMEM, GEMM, bias, ReLU.
        d_rows = []
        for l in range(rext):
            pieces = []
            for i in range(3):
                for j in range(3):
                    pieces.append(rows_a[l + i][:, c0 + j:c0 + j + wo])
                    pieces.append(rows_b[l + i][:, c0 + j:c0 + j + wo])
            if kzero is not None:
                pieces.append(kzero)
            patch = jnp.concatenate(pieces, axis=0)                        # (k_pad, wo)
            row = jnp.dot(w, patch, preferred_element_type=jnp.float32)    # (cout, wo)
            d_rows.append(jnp.maximum(row + bias, 0.0))

        if not head:
            for l in range(th):
                o_ref[:, 0, l, :] = d_rows[l].astype(o_ref.dtype)
        else:
            # Fused disparity head: 3x3 conv + sigmoid over the d0 strip held in VMEM.
            hw = hw_ref[...]                   # (1, head_kpad) bf16
            hbias = hbias_ref[...]             # (1, 1) f32
            scale = scale_ref[...]             # (1, 1) f32
            # halo rows outside the feature map are d0's zero padding
            d_rows[0] = jnp.where(t == 0, jnp.zeros_like(d_rows[0]), d_rows[0])
            d_rows[-1] = jnp.where(t == n_rt - 1, jnp.zeros_like(d_rows[-1]), d_rows[-1])
            zc = jnp.zeros((cout, 1), jnp.bfloat16)
            dp = [jnp.concatenate([zc, r.astype(jnp.bfloat16), zc], axis=1)  # (cout, wo+2)
                  for r in d_rows]
            hzero = jnp.zeros((head_kpad - hk, wo), jnp.bfloat16) if head_kpad > hk else None
            for l in range(th):
                pieces = []
                for i in range(3):
                    for j in range(3):
                        pieces.append(dp[l + i][:, j:j + wo])
                if hzero is not None:
                    pieces.append(hzero)
                patch = jnp.concatenate(pieces, axis=0)                     # (head_kpad, wo)
                logit = jnp.dot(hw, patch, preferred_element_type=jnp.float32) + hbias
                disp = pl.reciprocal(1.0 + jnp.exp(-logit), approx=True) * scale
                o_ref[:, 0, l, :] = disp.astype(o_ref.dtype)

    return kernel


def _choose_rows(ho, c_total, wp, target_bytes=1 << 20):
    """Output rows per tile: ~1 MiB slab DMA per step, divides Ho, multiple of 8 (or full Ho)."""
    want = max(8, int(target_bytes) // max(1, c_total * wp * 2))
    if ho <= want:
        return ho
    best = ho
    for cand in range(8, ho, 8):
        if ho % cand == 0 and cand <= want:
            best = cand
    return best


def conv3x3_s1_dual(src_a_pad, src_b_pad, weight, bias, *, head_weight=None,
                    head_bias=None, scale=1.0, out_dtype=jnp.bfloat16):
    """Fused stride-1 3x3 conv (+ReLU) over two already-padded CNHW sources (implicit channel
    concat), with an optional fused 3x3+sigmoid single-channel head (the disparity conv)."""
    head = head_weight is not None
    halo = 2 if head else 1                     # head needs a 1-row halo of the first conv
    ca, n, hp, wp = src_a_pad.shape
    cb, n2, hp2, wp2 = src_b_pad.shape
    assert (n, hp, wp) == (n2, hp2, wp2)
    ho, wo = hp - 2 * halo, wp - 2 * halo
    cout, cin, kh, kw = weight.shape
    assert cin == ca + cb and kh == 3 and kw == 3

    k = 9 * cin
    k_pad = _round_up(k, 16)
    w_mat = jnp.transpose(weight, (0, 2, 3, 1)).reshape(cout, k)
    if k_pad > k:
        w_mat = jnp.pad(w_mat, ((0, 0), (0, k_pad - k)))
    w_mat = w_mat.astype(jnp.bfloat16)
    b_col = bias.reshape(cout, 1).astype(jnp.float32)

    th = _choose_rows(ho, ca + cb, wp)
    n_rt = ho // th
    rows_slab = th + 2 * halo

    inputs = [src_a_pad.astype(jnp.bfloat16), src_b_pad.astype(jnp.bfloat16), w_mat, b_col]
    in_specs = [pl.BlockSpec(memory_space=pl.ANY),               # halo slabs DMA'd manually
                pl.BlockSpec(memory_space=pl.ANY),
                pl.BlockSpec((cout, k_pad), lambda bb, tt: (0, 0)),
                pl.BlockSpec((cout, 1), lambda bb, tt: (0, 0))]

    if head:
        hk = 9 * cout
        head_kpad = _round_up(hk, 16)
        hw_mat = jnp.transpose(head_weight, (0, 2, 3, 1)).reshape(1, hk)
        if head_kpad > hk:
            hw_mat = jnp.pad(hw_mat, ((0, 0), (0, head_kpad - hk)))
        inputs += [hw_mat.astype(jnp.bfloat16),
                   head_bias.reshape(1, 1).astype(jnp.float32),
                   jnp.full((1, 1), scale, jnp.float32)]         # traced scale is fine
        in_specs += [pl.BlockSpec((1, head_kpad), lambda bb, tt: (0, 0)),
                     pl.BlockSpec((1, 1), lambda bb, tt: (0, 0)),
                     pl.BlockSpec((1, 1), lambda bb, tt: (0, 0))]
        out_ch, o_dtype = 1, jnp.float32
    else:
        head_kpad = 0
        out_ch, o_dtype = cout, out_dtype

    kernel = _make_conv3x3_kernel(ca=ca, cb=cb, cout=cout, k_pad=k_pad, th=th, wo=wo,
                                  halo=halo, n_rt=n_rt, rows_slab=rows_slab,
                                  head=head, head_kpad=head_kpad)

    # exact VMEM budget: double-buffered slabs (lane/sublane padded) + resident weights +
    # double-buffered out tiles + headroom for in-kernel patch temporaries.
    lanes = _round_up(wp, 128)
    rows_pad = _round_up(rows_slab, 16)
    slab_bytes = 2 * (ca + cb) * rows_pad * lanes * 2
    out_bytes = 2 * out_ch * th * _round_up(wo, 128) * jnp.dtype(o_dtype).itemsize
    w_bytes = cout * k_pad * 2 + head_kpad * 2
    est = slab_bytes + out_bytes + w_bytes + (4 << 20)
    vmem_limit = int(min(max(est * 3 // 2, 16 << 20), _vmem_cap_bytes()))

    return pl.pallas_call(
        kernel,
        out_shape=jax.ShapeDtypeStruct((out_ch, n, ho, wo), o_dtype),
        grid=(n, n_rt),
        in_specs=in_specs,
        out_specs=pl.BlockSpec((out_ch, 1, th, wo), lambda bb, tt: (0, bb, tt, 0)),
        scratch_shapes=[pltpu.VMEM((2, ca, rows_slab, wp), jnp.bfloat16),
                        pltpu.VMEM((2, cb, rows_slab, wp), jnp.bfloat16),
                        pltpu.SemaphoreType.DMA((2,)),
                        pltpu.SemaphoreType.DMA((2,))],
        compiler_params=pltpu.CompilerParams(
            # batch axis "parallel" (v7x dual TC); the row-tile axis carries the manual
            # double-buffered slab DMA, so it stays "arbitrary".
            dimension_semantics=("parallel", "arbitrary"),
            vmem_limit_bytes=vmem_limit),
    )(*inputs)


# ----------------------------------------------------------------------------
# Model: RandomEncoder + DepthDecoder
# ----------------------------------------------------------------------------
def init_params(key, in_ch=3):
    ks = jax.random.split(key, 5)

    def conv_p(k, cout, cin):
        kw_, kb_ = jax.random.split(k)
        w = jax.random.normal(kw_, (cout, cin, 3, 3), jnp.float32) * 0.1
        b = jax.random.normal(kb_, (cout,), jnp.float32) * 0.01
        return w, b

    return {
        "enc1": conv_p(ks[0], 16, in_ch),       # stride 2
        "enc2": conv_p(ks[1], 32, 16),          # stride 2
        "dec1": conv_p(ks[2], 16, 32 + 16),     # on cat(up2(e2), e1)
        "dec0": conv_p(ks[3], 16, 16 + in_ch),  # on cat(up2(d1), image)
        "disp": conv_p(ks[4], 1, 16),           # sigmoid head (fused into dec0 kernel)
    }


def upsample_nearest_2x(x_cnhw):
    return jnp.repeat(jnp.repeat(x_cnhw, 2, axis=2), 2, axis=3)


def _pad_hw(x_cnhw, p):
    return jnp.pad(x_cnhw, ((0, 0), (0, 0), (p, p), (p, p)))


def random_encoder(params, image_cnhw):
    e1 = conv2d_gemm(image_cnhw, *params["enc1"], stride=2, activation="relu")
    e2 = conv2d_gemm(e1, *params["enc2"], stride=2, activation="relu")
    return e1, e2


def depth_decoder(params, image_cnhw, e1, e2, scale=1.0):
    # dec1: Conv3x3(cat(up2(e2), e1)) + ReLU — the concat and im2col stay in VMEM.
    d1 = conv3x3_s1_dual(_pad_hw(upsample_nearest_2x(e2), 1), _pad_hw(e1, 1),
                         *params["dec1"])
    # dec0 + disparity head fused in one kernel: d0 never reaches HBM.
    disp = conv3x3_s1_dual(_pad_hw(upsample_nearest_2x(d1), 2), _pad_hw(image_cnhw, 2),
                           *params["dec0"],
                           head_weight=params["disp"][0], head_bias=params["disp"][1],
                           scale=scale)
    return {"disp": disp}


def randomly_connected_model(params, image_nchw, scale=1.0):
    x = jnp.transpose(image_nchw, (1, 0, 2, 3)).astype(jnp.bfloat16)   # CNHW bf16 end-to-end
    e1, e2 = random_encoder(params, x)
    out = depth_decoder(params, x, e1, e2, scale=scale)
    return {"disp": jnp.transpose(out["disp"], (1, 0, 2, 3))}          # back to NCHW


# ----------------------------------------------------------------------------
# Pure-JAX reference (bf16-matched) for a numerical sanity check
# ----------------------------------------------------------------------------
def _ref_conv(x, w, b, stride):
    out = jax.lax.conv_general_dilated(
        x, w, (stride, stride), ((1, 1), (1, 1)),
        dimension_numbers=("NCHW", "OIHW", "NCHW"),
        precision=jax.lax.Precision.HIGHEST)
    return out + b.reshape(1, -1, 1, 1)


def reference_model(params, image_nchw, scale=1.0):
    q = lambda v: v.astype(jnp.bfloat16).astype(jnp.float32)    # mimic the kernels' bf16 inputs
    conv = lambda x, p, s: _ref_conv(q(x), q(p[0]), p[1], s)
    relu = lambda v: jnp.maximum(v, 0.0)
    up = lambda v: jnp.repeat(jnp.repeat(v, 2, axis=2), 2, axis=3)
    e1 = relu(conv(image_nchw, params["enc1"], 2))
    e2 = relu(conv(e1, params["enc2"], 2))
    d1 = relu(conv(jnp.concatenate([up(e2), e1], axis=1), params["dec1"], 1))
    d0 = relu(conv(jnp.concatenate([up(d1), image_nchw], axis=1), params["dec0"], 1))
    return jax.nn.sigmoid(conv(d0, params["disp"], 1)) * scale


if __name__ == "__main__":
    key = jax.random.PRNGKey(0)
    k_img, k_par = jax.random.split(key)

    image = jax.random.normal(k_img, (2, 3, 16, 16), jnp.float32)   # NCHW, like PyTorch
    params = init_params(k_par, in_ch=3)

    out = randomly_connected_model(params, image, scale=1.0)
    disp = jax.block_until_ready(out["disp"])
    assert disp.shape == (2, 1, 16, 16)
    assert bool(jnp.all(jnp.isfinite(disp)))

    ref = reference_model(params, image, scale=1.0)
    err = float(jnp.max(jnp.abs(disp - ref)))
    assert err < 3e-2, f"disparity mismatch vs reference: max abs err {err}"
    print("KERNEL_OK")
</pallas_src>

<mosaic_0001>
module attributes {stable_mosaic.version = 11 : i64} {
  func.func @_gemm_kernel(%arg0: i32, %arg1: memref<16x32xbf16, #tpu.memory_space<vmem>>, %arg2: memref<32x128xbf16, #tpu.memory_space<vmem>>, %arg3: memref<16x1xf32, #tpu.memory_space<vmem>>, %arg4: memref<16x128xbf16, #tpu.memory_space<vmem>>) attributes {dimension_semantics = [#tpu.dimension_semantics<parallel>], iteration_bounds = array<i64: 1>, scalar_prefetch = 0 : i64, scratch_operands = 0 : i64, tpu.core_type = #tpu.core_type<tc>, window_params = [{pipeline_mode = #tpu.pipeline_mode<synchronous>, transform_indices = @transform_0, window_bounds = array<i64: 16, 32>}, {transform_indices = @transform_1, window_bounds = array<i64: 32, 128>}, {pipeline_mode = #tpu.pipeline_mode<synchronous>, transform_indices = @transform_2, window_bounds = array<i64: 16, 1>}, {transform_indices = @transform_3, window_bounds = array<i64: 16, 128>}]} {
    %c0 = arith.constant 0 : index
    %c0_0 = arith.constant 0 : index
    %0 = vector.load %arg1[%c0, %c0_0] : memref<16x32xbf16, #tpu.memory_space<vmem>>, vector<16x32xbf16>
    %c0_1 = arith.constant 0 : index
    %c0_2 = arith.constant 0 : index
    %1 = vector.load %arg2[%c0_1, %c0_2] : memref<32x128xbf16, #tpu.memory_space<vmem>>, vector<32x128xbf16>
    %cst = arith.constant dense<0.000000e+00> : vector<16x128xf32>
    %2 = tpu.matmul %0, %1, %cst {dimension_numbers = #tpu.dot_dimension_numbers<[1], [0], [0], [1], [0, 0, 1, 1], [], []>} : vector<16x32xbf16>, vector<32x128xbf16>, vector<16x128xf32> -> vector<16x128xf32>
    %c0_3 = arith.constant 0 : index
    %c0_4 = arith.constant 0 : index
    %3 = vector.load %arg3[%c0_3, %c0_4] : memref<16x1xf32, #tpu.memory_space<vmem>>, vector<16x1xf32>
    %4 = vector.broadcast %3 : vector<16x1xf32> to vector<16x128xf32>
    %5 = arith.addf %2, %4 : vector<16x128xf32>
    %cst_5 = arith.constant 0.000000e+00 : f32
    %6 = vector.broadcast %cst_5 : f32 to vector<16x128xf32>
    %7 = arith.maximumf %5, %6 : vector<16x128xf32>
    %8 = arith.truncf %7 : vector<16x128xf32> to vector<16x128xbf16>
    %c0_6 = arith.constant 0 : index
    %c0_7 = arith.constant 0 : index
    %9 = vector.load %arg4[%c0_6, %c0_7] : memref<16x128xbf16, #tpu.memory_space<vmem>>, vector<16x128xbf16>
    tpu.vector_store %arg4[%c0_6, %c0_7], %8 {strides = array<i32>} : memref<16x128xbf16, #tpu.memory_space<vmem>>, vector<16x128xbf16>,
    return
  }
  func.func @transform_0(%arg0: i32) -> (i32, i32) {
    %c0_i32 = arith.constant 0 : i32
    %c0_i32_0 = arith.constant 0 : i32
    %c0_i32_1 = arith.constant 0 : i32
    return %c0_i32, %c0_i32_0 : i32, i32
  }
  func.func @transform_1(%arg0: i32) -> (i32, i32) {
    %c0_i32 = arith.constant 0 : i32
    %c0_i32_0 = arith.constant 0 : i32
    return %c0_i32, %arg0 : i32, i32
  }
  func.func @transform_2(%arg0: i32) -> (i32, i32) {
    %c0_i32 = arith.constant 0 : i32
    %c0_i32_0 = arith.constant 0 : i32
    %c0_i32_1 = arith.constant 0 : i32
    return %c0_i32, %c0_i32_0 : i32, i32
  }
  func.func @transform_3(%arg0: i32) -> (i32, i32) {
    %c0_i32 = arith.constant 0 : i32
    %c0_i32_0 = arith.constant 0 : i32
    return %c0_i32, %arg0 : i32, i32
  }
}

</mosaic_0001>

<bundles_post_ra>
// kernel: tpu_custom_call.1
= control target key start
LH: loop header
LB: loop body
LE: loop exit
PB: predicated region body
PF: predicated region fallthrough
CT: control target
= control target key end

     0   :  { %8 = vsyncpa [#allocation3], 0  ;;  %s269_s0 = inlined_call_operand.hbm [shape: bf16[16,32], index: 0, kind: input, shape index: {}]   ;;  %s270_s1 = inlined_call_operand.vmem [shape: bf16[32,128], index: 1, kind: input, shape index: {}]   ;;  %s271_s2 = inlined_call_operand.vmem [shape: f32[16,1], index: 2, kind: input, shape index: {}]   ;;  %s272_s3 = inlined_call_operand.hbm [shape: bf16[16,128], index: 3, kind: output, shape index: {}]  }
   0x1   :  { %9 = vsyncpa [#allocation4], 0  ;;  %s218_s12 = smov [#allocation2]  }
   0x2   :  { %s15_s13 = sshll.u32 %s218_s12, 4  ;;  %s16_s13 = int_to_ptr.vmem [resolvable:$true] %s15_s13 }
   0x3   :  { %s182_s14 = scalar_lea.vmem %s16_s13, 128  ;;  %p187_p1 = scmp.lt.s32.totalorder %s16_s13, %s16_s13 }
   0x4   :  { %p183_p0 = scmp.ne.s32.totalorder %s16_s13, %s182_s14  ;;  %p188_p2 = scmp.lt.s32.totalorder %s182_s14, %s182_s14 }
   0x6   :  { %p189_p3 = por %p188_p2, %p187_p1 }
   0x8   :  { %p190_p4 = pnand %p189_p3, %p183_p0 }
   0xa   :  { %193 = shalt.err (!%p190_p4)
}
   0xb   :  { %s219_s15 = smov 64   ;;  %s220_s16 = smov 4  }
   0xc   :  { %21 = dma.hbm_to_vmem [thread:$0]  %s269_s0, 128, %s16_s13, [#allocation3], %s219_s15, %s219_s15, %s220_s16  }
   0xd   :  { %214 = dma.done.wait [#allocation3], 128  }
   0xe   :  { %215 = vsyncadd [#allocation3], 4294967168  ;;  %v221_v0 = vmov 0.0   ;;  %vm222_vm0 = vmmov 0   ;;  %v223_v1 = vmov 0   ;;  %v171_v2 = vld [vmem:[%s270_s1 + $0x8] sm:$0xff]  }
   0xf   :  { %155 = vmatprep.subr.bf16.mxu0 %v221_v0  ;;  %159 = vmatprep.mubr.msk.bf16.mxu0 %vm222_vm0, %v221_v0  ;;  %v172_v3 = vld [vmem:[%s270_s1] sm:$0xff]   ;;  %v37_v6 = vld [vmem:[%s271_s2 + $0x8] sm:$0xff]  ;;  %vm65_vm1 = vcmask 261120   ;;  %s224_s1 = smov [#allocation5]  }
  0x10   :  { %170 = vset.pattern.permute.xlu0 %v223_v1  ;;  %156 = vmatpush3.bf16.msra.mxu0 %v171_v2  ;;  %v36_v4 = vld [vmem:[%s271_s2] sm:$0xff]  ;;  %s127_s26 = sshll.u32 %s224_s1, 4  ;;  %s128_s26 = int_to_ptr.vmem [resolvable:$true] %s127_s26 }
  0x11   :  { %157 = vmatprep.subr.bf16.mxu0 %v221_v0  ;;  %40 = vperm.xlu0 %170, %v36_v4   ;;  %v173_v5 = vld [vmem:[#allocation2] sm:$0xff]   ;;  %s194_s2 = scalar_lea.vmem %s128_s26, 128  ;;  %p199_p6 = scmp.lt.s32.totalorder %s128_s26, %s128_s26 }
  0x12   :  { %p195_p5 = scmp.ne.s32.totalorder %s128_s26, %s194_s2  ;;  %p200_p7 = scmp.lt.s32.totalorder %s194_s2, %s194_s2 }
  0x14   :  { %158 = vmatpush3.bf16.msra.mxu0 %v172_v3  ;;  %p201_p8 = por %p200_p7, %p199_p6 }
  0x15   :  { %45 = vperm.xlu0 %170, %v37_v6  }
  0x16   :  { %p202_p9 = pnand %p201_p8, %p195_p5 }
  0x17   :  { %160 = vmatmul.mubr.msk.bf16.vlgmr.msra.gmra.mxu0 %vm65_vm1, %v173_v5 }
  0x8c   :  { %v41_v7 = vpop.permute.xlu0 %40 }
  0x90   :  { %v46_v11 = vpop.permute.xlu0 %45 }
  0xd7   :  { %v103_v8 = vpop.f32.mrf.mxu0 }
  0xd8   :  { %v104_v10 = vadd.f32 %v103_v8, %v41_v7 }
  0xd9   :  { %v161_v9 = vpop.f32.mrf.mxu0 }
  0xda   :  { %v110_v15 = vmax.f32 %v104_v10, 0.0 }
  0xdb   :  { %v106_v12 = vpop.f32.mrf.mxu0 }
  0xdc   :  { %v107_v13 = vadd.f32 %v106_v12, %v46_v11 }
  0xdd   :  { %v162_v14 = vpop.f32.mrf.mxu0 }
  0xde   :  { %v111_v16 = vmax.f32 %v107_v13, 0.0 }
  0xe0   :  { %v150_v17 = vpack.c.bf16 %v111_v16, %v110_v15 }
  0xe2   :  { %151 = vst [vmem:[#allocation5] sm:$0xff] %v150_v17  }
  0xe3   :  { %205 = shalt.err (!%p202_p9)
}
  0xe4   :  { %133 = dma.vmem_to_hbm [thread:$0]  %s128_s26, 128, %s272_s3, [#allocation4], %s219_s15, %s219_s15, %s220_s16  }
  0xe5   :  { %216 = dma.done.wait [#allocation4], 128  }
  0xe6   :  { %217 = vsyncadd [#allocation4], 4294967168 }
  0xe7   :  { %137 = vsyncpa [#allocation3], 1 }
  0xe8   :  { %138 = vsyncpa [#allocation4], 1 }

</bundles_post_ra>
